<compile_context>
chip_gen: v7x
topology: tpu7x:2x2x1
jax: 0.10.0
libtpu: 0.0.40
codegen_flags: <defaults>
</compile_context>

<pallas_src>
import functools

import jax
import jax.numpy as jnp
from jax import lax
from jax.experimental import pallas as pl
from jax.experimental.pallas import tpu as pltpu


# ----------------------------------------------------------------------------
# VMEM budgeting (generation aware).
# ----------------------------------------------------------------------------
@functools.lru_cache(maxsize=None)
def _vmem_capacity_bytes():
    try:
        return int(pltpu.get_tpu_info().vmem_capacity_bytes)
    except Exception:
        return 64 * 1024 * 1024          # conservative (v7x-sized) fallback


def _vmem_budget_bytes():
    # Working-set target used for tile/chunk sizing (headroom for Mosaic internals).
    return int(_vmem_capacity_bytes() * 0.70)


def _vmem_limit_bytes():
    # Explicit scoped-VMEM limit handed to the compiler (> budget, < physical).
    return int(_vmem_capacity_bytes() * 0.90)


def _round_up(x, m):
    return ((x + m - 1) // m) * m


# ----------------------------------------------------------------------------
# Kernel 1: leading Linear + ReLU for the whole sequence (row-tiled).
# ----------------------------------------------------------------------------
def _linear_relu_kernel(x_ref, w_ref, b_ref, o_ref):
    x = x_ref[...].astype(w_ref.dtype)
    h = jnp.dot(x, w_ref[...], preferred_element_type=jnp.float32) + b_ref[...]
    o_ref[...] = jnp.maximum(h, 0.0)


def linear_relu(x2d, w_t, b_row):
    N, In = x2d.shape
    H = w_t.shape[1]
    wsz = jnp.dtype(w_t.dtype).itemsize

    budget = _vmem_budget_bytes()
    fixed = 2 * (In * H * wsz + H * 4)          # double-buffered weight + bias
    per_row = 2 * (In * 4 + H * 4)              # double-buffered in/out rows
    tn = max(8, min(N, (budget - fixed) // per_row))
    if tn < N:
        tn = max(8, (tn // 8) * 8)              # sublane-align partial tiles
    tn = int(tn)

    return pl.pallas_call(
        _linear_relu_kernel,
        out_shape=jax.ShapeDtypeStruct((N, H), jnp.float32),
        grid_spec=pltpu.PrefetchScalarGridSpec(
            num_scalar_prefetch=0,
            grid=(pl.cdiv(N, tn),),
            in_specs=[
                pl.BlockSpec((tn, In), lambda i: (i, 0)),
                pl.BlockSpec((In, H), lambda i: (0, 0)),
                pl.BlockSpec((1, H), lambda i: (0, 0)),
            ],
            out_specs=pl.BlockSpec((tn, H), lambda i: (i, 0)),
        ),
        compiler_params=pltpu.CompilerParams(
            dimension_semantics=("parallel",),
            vmem_limit_bytes=_vmem_limit_bytes()),
    )(x2d, w_t, b_row)


# ----------------------------------------------------------------------------
# Kernel 2: fused GRU layer.
#   grid = (batch_tiles [parallel], time_chunks [arbitrary])
#   Per chunk:
#     prologue : gi = x_chunk @ Wih^T + bih  (one MXU op, VMEM scratch only)
#     loop     : per step, ONE fused (tb,H)@(H,3H) hidden matmul + gate math
#     epilogue : (last layer only) out = tanh(y_chunk) @ Wo^T + bo
#   PyTorch gate order r,z,n;  n = tanh(i_n + r*h_n);  h' = (1-z)*n + z*h.
# ----------------------------------------------------------------------------
def _gru_layer_kernel(*refs, seq_len, chunk, hidden, fuse_output, unroll):
    H = hidden
    if fuse_output:
        (x_ref, h0_ref, wih_ref, bih_ref, whh_ref, bhh_ref,
         wo_ref, bo_ref, out_ref, hout_ref, gi_sc, h_sc, y_sc) = refs
        y_tgt = y_sc
    else:
        (x_ref, h0_ref, wih_ref, bih_ref, whh_ref, bhh_ref,
         y_ref, hout_ref, gi_sc, h_sc) = refs
        y_tgt = y_ref

    c = pl.program_id(1)

    @pl.when(c == 0)
    def _():
        h_sc[...] = h0_ref[...]

    tb = x_ref.shape[1]
    hin = x_ref.shape[2]

    # Prologue: whole-chunk input->hidden gates (bih folded in), kept in VMEM.
    xm = x_ref[...].reshape(chunk * tb, hin).astype(wih_ref.dtype)
    gi = jnp.dot(xm, wih_ref[...], preferred_element_type=jnp.float32) + bih_ref[...]
    gi_sc[...] = gi.reshape(chunk, tb, 3 * H)

    whh = whh_ref[...]
    bhh = bhh_ref[...]
    # Number of valid timesteps in this chunk (final chunk may be partial).
    valid = jnp.minimum(chunk, seq_len - c * chunk)

    def step(t, h):
        gh = jnp.dot(h.astype(whh.dtype), whh,
                     preferred_element_type=jnp.float32) + bhh
        gi_t = gi_sc[t]
        r = jax.nn.sigmoid(gi_t[:, :H] + gh[:, :H])
        z = jax.nn.sigmoid(gi_t[:, H:2 * H] + gh[:, H:2 * H])
        n = jnp.tanh(gi_t[:, 2 * H:] + r * gh[:, 2 * H:])
        h_new = (1.0 - z) * n + z * h
        h_new = jnp.where(t < valid, h_new, h)      # mask padded tail steps
        y_tgt[t] = h_new
        return h_new

    h_last = lax.fori_loop(0, chunk, step, h_sc[...], unroll=unroll)
    h_sc[...] = h_last
    # Write the running hidden every chunk (robust: the final chunk's value is
    # what persists; no reliance on last-chunk-only residency invariants).
    hout_ref[...] = h_last

    if fuse_output:
        # Epilogue: fused tanh + output Linear on this chunk's y (still in VMEM).
        o_cols = out_ref.shape[-1]
        yt = jnp.tanh(y_sc[...]).reshape(chunk * tb, H).astype(wo_ref.dtype)
        o = jnp.dot(yt, wo_ref[...], preferred_element_type=jnp.float32) + bo_ref[...]
        out_ref[...] = o.reshape(chunk, tb, o_cols)


def gru_layer(x_sbh, h0, wih_t, bih, whh_t, bhh, *,
              fuse_output=False, wo_t=None, bo=None):
    S, Bp, Hin = x_sbh.shape
    H = h0.shape[-1]
    Op = int(wo_t.shape[1]) if fuse_output else H
    wsz = jnp.dtype(wih_t.dtype).itemsize
    xsz = jnp.dtype(x_sbh.dtype).itemsize

    # Batch-parallel leading grid axis (v7x megacore); near-free on 1-TC chips.
    n_btiles = 2 if (Bp % 16 == 0) else 1
    tb = Bp // n_btiles

    # VMEM-aware time-chunk selection.
    budget = _vmem_budget_bytes()
    fixed = (2 * (Hin + H) * 3 * H * wsz        # wih_t, whh_t (double-buffered)
             + 4 * 3 * H * 4                    # biases
             + 2 * tb * H * 4                   # h0 block
             + 2 * tb * H * 4                   # hout block
             + tb * H * 4)                      # h scratch
    per_step = (2 * tb * Hin * xsz                              # x chunk (2x buf)
                + 2 * tb * (Op if fuse_output else H) * 4       # out/y chunk
                + tb * 3 * H * 4)                               # gi scratch
    if fuse_output:
        fixed += 2 * (H * Op * wsz + Op * 4)
        per_step += tb * H * 4                                  # y scratch
    chunk = int(max(1, min(S, (budget - fixed) // per_step)))
    n_chunks = int(pl.cdiv(S, chunk))
    # Moderate unroll: LLO scheduling wins without blowing the 64-vreg file.
    unroll = int(max(1, min(8, chunk)))

    kernel = functools.partial(
        _gru_layer_kernel, seq_len=S, chunk=chunk, hidden=H,
        fuse_output=fuse_output, unroll=unroll)

    full2 = lambda b, c: (0, 0)
    in_specs = [
        pl.BlockSpec((chunk, tb, Hin), lambda b, c: (c, b, 0)),
        pl.BlockSpec((tb, H), lambda b, c: (b, 0)),
        pl.BlockSpec((Hin, 3 * H), full2),
        pl.BlockSpec((1, 3 * H), full2),
        pl.BlockSpec((H, 3 * H), full2),
        pl.BlockSpec((1, 3 * H), full2),
    ]
    inputs = [x_sbh, h0, wih_t, bih, whh_t, bhh]
    scratch = [pltpu.VMEM((chunk, tb, 3 * H), jnp.float32),
               pltpu.VMEM((tb, H), jnp.float32)]
    if fuse_output:
        in_specs += [pl.BlockSpec((H, Op), full2), pl.BlockSpec((1, Op), full2)]
        inputs += [wo_t, bo]
        main_shape = jax.ShapeDtypeStruct((S, Bp, Op), jnp.float32)
        main_spec = pl.BlockSpec((chunk, tb, Op), lambda b, c: (c, b, 0))
        scratch.append(pltpu.VMEM((chunk, tb, H), jnp.float32))
    else:
        main_shape = jax.ShapeDtypeStruct((S, Bp, H), jnp.float32)
        main_spec = pl.BlockSpec((chunk, tb, H), lambda b, c: (c, b, 0))

    out, h_fin = pl.pallas_call(
        kernel,
        out_shape=(main_shape, jax.ShapeDtypeStruct((Bp, H), jnp.float32)),
        grid_spec=pltpu.PrefetchScalarGridSpec(
            num_scalar_prefetch=0,
            grid=(n_btiles, n_chunks),
            in_specs=in_specs,
            out_specs=[main_spec, pl.BlockSpec((tb, H), lambda b, c: (b, 0))],
            scratch_shapes=scratch),
        compiler_params=pltpu.CompilerParams(
            dimension_semantics=("parallel", "arbitrary"),
            vmem_limit_bytes=_vmem_limit_bytes()),
    )(*inputs)
    return out, h_fin


# ----------------------------------------------------------------------------
# Parameter init (PyTorch-style uniform) in PyTorch layout, plus a one-time
# prepare step: pad H to a multiple of 128 (per gate), transpose weights, and
# cast matmul operands.  Biases stay f32 (added after f32 accumulation).
# ----------------------------------------------------------------------------
def init_params(key, input_size, hidden_size, output_size, num_layers):
    def uni(k, shape, fan):
        bound = 1.0 / jnp.sqrt(fan)
        return jax.random.uniform(k, shape, jnp.float32, -bound, bound)

    keys = jax.random.split(key, 4 + 4 * num_layers)
    p = {}
    p["w1"] = uni(keys[0], (hidden_size, input_size), input_size)
    p["b1"] = uni(keys[1], (hidden_size,), input_size)
    p["wo"] = uni(keys[2], (output_size, hidden_size), hidden_size)
    p["bo"] = uni(keys[3], (output_size,), hidden_size)
    p["gru"] = []
    for layer in range(num_layers):
        k0, k1, k2, k3 = keys[4 + 4 * layer:8 + 4 * layer]
        p["gru"].append(dict(
            wih=uni(k0, (3 * hidden_size, hidden_size), hidden_size),
            whh=uni(k1, (3 * hidden_size, hidden_size), hidden_size),
            bih=uni(k2, (3 * hidden_size,), hidden_size),
            bhh=uni(k3, (3 * hidden_size,), hidden_size),
        ))
    return p


def prepare_params(params, matmul_dtype=jnp.bfloat16):
    """Pass matmul_dtype=jnp.float32 for tight-parity testing; use the default
    bfloat16 in production (native single-pass MXU, half the weight DMA/VMEM)."""
    H = params["w1"].shape[0]
    O = params["wo"].shape[0]
    Hp = _round_up(H, 128)

    def pad_rows(w, rows_to):
        return jnp.pad(w, ((0, rows_to - w.shape[0]),) + ((0, 0),) * (w.ndim - 1))

    def pad_gate_mat(w, in_pad):     # (3H, In) -> (3Hp, in_pad), per-gate padding
        parts = jnp.split(w, 3, axis=0)
        parts = [jnp.pad(x, ((0, Hp - H), (0, in_pad - x.shape[1]))) for x in parts]
        return jnp.concatenate(parts, axis=0)

    def pad_gate_vec(b):             # (3H,) -> (3Hp,)
        parts = jnp.split(b, 3)
        return jnp.concatenate([jnp.pad(x, (0, Hp - H)) for x in parts])

    w1_p = pad_rows(params["w1"], Hp)                      # (Hp, In)
    b1_p = pad_rows(params["b1"], Hp)                      # (Hp,)
    wo_p = jnp.pad(params["wo"], ((0, 0), (0, Hp - H)))    # (O, Hp)

    prep = {
        "hidden_size": H,
        "padded_hidden": Hp,
        "output_size": O,
        "w1_t": w1_p.T.astype(matmul_dtype),               # (In, Hp)
        "b1": b1_p[None, :].astype(jnp.float32),           # (1, Hp)
        "wo_t": wo_p.T.astype(matmul_dtype),               # (Hp, O)
        "bo": params["bo"][None, :].astype(jnp.float32),   # (1, O)
        "gru": [],
    }
    for gp in params["gru"]:
        wih_p = pad_gate_mat(gp["wih"], Hp)                # (3Hp, Hp)
        whh_p = pad_gate_mat(gp["whh"], Hp)                # (3Hp, Hp)
        prep["gru"].append(dict(
            wih_t=wih_p.T.astype(matmul_dtype),            # (Hp, 3Hp)
            whh_t=whh_p.T.astype(matmul_dtype),            # (Hp, 3Hp)
            bih=pad_gate_vec(gp["bih"])[None, :].astype(jnp.float32),
            bhh=pad_gate_vec(gp["bhh"])[None, :].astype(jnp.float32),
        ))
    return prep


# ----------------------------------------------------------------------------
# Full forward pass (time-major end-to-end, one transpose in / one out,
# batch padded to a multiple of 8, hidden padded to a multiple of 128).
# ----------------------------------------------------------------------------
def decoder_rnn_forward(encoded_input, hidden, prep):
    B, S, In = encoded_input.shape
    H = prep["hidden_size"]
    Hp = prep["padded_hidden"]
    L = len(prep["gru"])
    Bp = _round_up(B, 8)

    x_tm = jnp.transpose(encoded_input, (1, 0, 2))          # (S, B, In)
    if Bp != B:
        x_tm = jnp.pad(x_tm, ((0, 0), (0, Bp - B), (0, 0)))

    # Leading Linear + ReLU for the whole sequence.
    x0 = linear_relu(x_tm.reshape(S * Bp, In), prep["w1_t"], prep["b1"])
    layer_in = x0.reshape(S, Bp, Hp)

    h_pad = hidden
    if Bp != B or Hp != H:
        h_pad = jnp.pad(hidden, ((0, 0), (0, Bp - B), (0, Hp - H)))

    h_finals = []
    decoded_sm = None
    for l, gp in enumerate(prep["gru"]):
        last = (l == L - 1)
        res, h_fin = gru_layer(
            layer_in, h_pad[l], gp["wih_t"], gp["bih"], gp["whh_t"], gp["bhh"],
            fuse_output=last,
            wo_t=prep["wo_t"] if last else None,
            bo=prep["bo"] if last else None)
        h_finals.append(h_fin)
        if last:
            decoded_sm = res                                # (S, Bp, O)
        else:
            layer_in = res                                  # (S, Bp, Hp)

    new_hidden = jnp.stack(h_finals, axis=0)[:, :B, :H]     # (L, B, H)
    decoded = decoded_sm[:, :B, :].transpose(1, 0, 2)       # (B, S, O)
    return decoded, new_hidden


# ----------------------------------------------------------------------------
# Pure-JAX reference (PyTorch semantics, eval mode) for the parity check.
# ----------------------------------------------------------------------------
def reference_forward(encoded_input, hidden, params):
    B, S, _ = encoded_input.shape
    H = params["w1"].shape[0]
    x = jax.nn.relu(encoded_input @ params["w1"].T + params["b1"])
    layer_in = x
    h_finals = []
    for l, gp in enumerate(params["gru"]):
        hprev = hidden[l]
        outs = []
        for t in range(S):
            xt = layer_in[:, t]
            gi = xt @ gp["wih"].T + gp["bih"]
            gh = hprev @ gp["whh"].T + gp["bhh"]
            i_r, i_z, i_n = gi[:, :H], gi[:, H:2 * H], gi[:, 2 * H:]
            h_r, h_z, h_n = gh[:, :H], gh[:, H:2 * H], gh[:, 2 * H:]
            r = jax.nn.sigmoid(i_r + h_r)
            z = jax.nn.sigmoid(i_z + h_z)
            n = jnp.tanh(i_n + r * h_n)
            hprev = (1.0 - z) * n + z * hprev
            outs.append(hprev)
        layer_in = jnp.stack(outs, axis=1)
        h_finals.append(hprev)
    y = jnp.tanh(layer_in)
    out = y @ params["wo"].T + params["bo"]
    return out, jnp.stack(h_finals, axis=0)


if __name__ == "__main__":
    # Full-f32 matmul precision everywhere so the Pallas kernels and the pure-JAX
    # reference quantize inputs identically (tight parity check).
    jax.config.update("jax_default_matmul_precision", "highest")

    B, S = 2, 8
    input_size, hidden_size, output_size, num_layers = 16, 32, 16, 2

    key = jax.random.PRNGKey(0)
    k_x, k_h, k_p = jax.random.split(key, 3)
    encoded_input = jax.random.normal(k_x, (B, S, input_size), jnp.float32)
    hidden = jax.random.normal(k_h, (num_layers, B, hidden_size), jnp.float32)
    params = init_params(k_p, input_size, hidden_size, output_size, num_layers)
    # float32 matmul operands for the parity check; default (bf16) in production.
    prep = prepare_params(params, matmul_dtype=jnp.float32)

    out, new_hidden = decoder_rnn_forward(encoded_input, hidden, prep)
    out = jax.block_until_ready(out)
    new_hidden = jax.block_until_ready(new_hidden)

    ref_out, ref_hidden = reference_forward(encoded_input, hidden, params)
    assert out.shape == (B, S, output_size)
    assert new_hidden.shape == (num_layers, B, hidden_size)
    assert jnp.allclose(out, ref_out, atol=2e-4, rtol=2e-4), \
        float(jnp.max(jnp.abs(out - ref_out)))
    assert jnp.allclose(new_hidden, ref_hidden, atol=2e-4, rtol=2e-4), \
        float(jnp.max(jnp.abs(new_hidden - ref_hidden)))

    print("KERNEL_OK")
</pallas_src>

<mosaic_0001>
module attributes {stable_mosaic.version = 11 : i64} {
  func.func @_linear_relu_kernel(%arg0: i32, %arg1: memref<64x16xf32, #tpu.memory_space<vmem>>, %arg2: memref<16x128xf32, #tpu.memory_space<vmem>>, %arg3: memref<1x128xf32, #tpu.memory_space<vmem>>, %arg4: memref<64x128xf32, #tpu.memory_space<vmem>>) attributes {dimension_semantics = [#tpu.dimension_semantics<parallel>], iteration_bounds = array<i64: 1>, scalar_prefetch = 0 : i64, scratch_operands = 0 : i64, tpu.core_type = #tpu.core_type<tc>, window_params = [{transform_indices = @transform_0, window_bounds = array<i64: 64, 16>}, {pipeline_mode = #tpu.pipeline_mode<synchronous>, transform_indices = @transform_1, window_bounds = array<i64: 16, 128>}, {pipeline_mode = #tpu.pipeline_mode<synchronous>, transform_indices = @transform_2, window_bounds = array<i64: 1, 128>}, {transform_indices = @transform_3, window_bounds = array<i64: 64, 128>}]} {
    %c0 = arith.constant 0 : index
    %c0_0 = arith.constant 0 : index
    %0 = vector.load %arg1[%c0, %c0_0] : memref<64x16xf32, #tpu.memory_space<vmem>>, vector<64x16xf32>
    %c0_1 = arith.constant 0 : index
    %c0_2 = arith.constant 0 : index
    %1 = vector.load %arg2[%c0_1, %c0_2] : memref<16x128xf32, #tpu.memory_space<vmem>>, vector<16x128xf32>
    %cst = arith.constant dense<0.000000e+00> : vector<64x128xf32>
    %2 = tpu.matmul %0, %1, %cst {dimension_numbers = #tpu.dot_dimension_numbers<[1], [0], [0], [1], [0, 0, 1, 1], [], []>, precision = #tpu.contract_precision<fp32>} : vector<64x16xf32>, vector<16x128xf32>, vector<64x128xf32> -> vector<64x128xf32>
    %c0_3 = arith.constant 0 : index
    %c0_4 = arith.constant 0 : index
    %3 = vector.load %arg3[%c0_3, %c0_4] : memref<1x128xf32, #tpu.memory_space<vmem>>, vector<1x128xf32>
    %4 = vector.broadcast %3 : vector<1x128xf32> to vector<64x128xf32>
    %5 = arith.addf %2, %4 : vector<64x128xf32>
    %cst_5 = arith.constant 0.000000e+00 : f32
    %6 = vector.broadcast %cst_5 : f32 to vector<64x128xf32>
    %7 = arith.maximumf %5, %6 : vector<64x128xf32>
    %c0_6 = arith.constant 0 : index
    %c0_7 = arith.constant 0 : index
    %8 = vector.load %arg4[%c0_6, %c0_7] : memref<64x128xf32, #tpu.memory_space<vmem>>, vector<64x128xf32>
    tpu.vector_store %arg4[%c0_6, %c0_7], %7 {strides = array<i32>} : memref<64x128xf32, #tpu.memory_space<vmem>>, vector<64x128xf32>,
    return
  }
  func.func @transform_0(%arg0: i32) -> (i32, i32) {
    %c0_i32 = arith.constant 0 : i32
    %c0_i32_0 = arith.constant 0 : i32
    return %arg0, %c0_i32 : i32, i32
  }
  func.func @transform_1(%arg0: i32) -> (i32, i32) {
    %c0_i32 = arith.constant 0 : i32
    %c0_i32_0 = arith.constant 0 : i32
    %c0_i32_1 = arith.constant 0 : i32
    return %c0_i32, %c0_i32_0 : i32, i32
  }
  func.func @transform_2(%arg0: i32) -> (i32, i32) {
    %c0_i32 = arith.constant 0 : i32
    %c0_i32_0 = arith.constant 0 : i32
    %c0_i32_1 = arith.constant 0 : i32
    return %c0_i32, %c0_i32_0 : i32, i32
  }
  func.func @transform_3(%arg0: i32) -> (i32, i32) {
    %c0_i32 = arith.constant 0 : i32
    %c0_i32_0 = arith.constant 0 : i32
    return %arg0, %c0_i32 : i32, i32
  }
}

</mosaic_0001>

<bundles_post_ra>
// kernel: tpu_custom_call.1
= control target key start
LH: loop header
LB: loop body
LE: loop exit
PB: predicated region body
PF: predicated region fallthrough
CT: control target
= control target key end

     0   :  { %vm32_vm0 = vcmask 130048   ;;  %s1255_s0 = inlined_call_operand.vmem [shape: f32[64,16], index: 0, kind: input, shape index: {}]   ;;  %s1256_s1 = inlined_call_operand.vmem [shape: f32[16,128], index: 1, kind: input, shape index: {}]   ;;  %s1257_s2 = inlined_call_operand.vmem [shape: f32[1,128], index: 2, kind: input, shape index: {}]   ;;  %s1258_s3 = inlined_call_operand.hbm [shape: f32[64,128], index: 3, kind: output, shape index: {}]  }
   0x1   :  { %v23_v0 = vld [vmem:[%s1256_s1] sm:$0xff]  ;;  %v24_v1 = vld [vmem:[%s1256_s1 + $0x8] sm:$0xff]  ;;  %v17_v7 = vld [vmem:[%s1255_s0 + $0x10] sm:$0xff] }
   0x2   :  { %v15_v2 = vld [vmem:[%s1255_s0] sm:$0xff]  ;;  %v58_v3 = vand.u32 4294901760, %v23_v0  ;;  %v61_v4 = vand.u32 4294901760, %v24_v1  ;;  %v16_v6 = vld [vmem:[%s1255_s0 + $0x8] sm:$0xff]  ;;  %v18_v8 = vld [vmem:[%s1255_s0 + $0x18] sm:$0xff]  ;;  %v40_v11 = vsel %vm32_vm0, %v17_v7, 0 }
   0x3   :  { %v34_v5 = vsel %vm32_vm0, %v15_v2, 0  ;;  %v37_v10 = vsel %vm32_vm0, %v16_v6, 0  ;;  %v43_v12 = vsel %vm32_vm0, %v18_v8, 0  ;;  %v19_v13 = vld [vmem:[%s1255_s0 + $0x20] sm:$0xff]  ;;  %v1159_v16 = vand.u32 4294901760, %v40_v11  ;;  %v20_v18 = vld [vmem:[%s1255_s0 + $0x28] sm:$0xff] }
   0x4   :  { %v1147_v9 = vand.u32 4294901760, %v34_v5  ;;  %v1155_v14 = vpack.c.bf16 %v61_v4, %v58_v3  ;;  %v1157_v15 = vand.u32 4294901760, %v37_v10  ;;  %v206_v17 = vsub.f32 %v23_v0, %v58_v3 }
   0x5   :  { %8 = vsyncpa [#allocation3], 0  ;;  %v213_v20 = vsub.f32 %v24_v1, %v61_v4  ;;  %v1167_v21 = vand.u32 4294901760, %v43_v12  ;;  %v46_v22 = vsel %vm32_vm0, %v19_v13, 0  ;;  %v1176_v24 = vsub.f32 %v40_v11, %v1159_v16  ;;  %v21_v39 = vld [vmem:[%s1255_s0 + $0x30] sm:$0xff]  ;;  %v22_v48 = vld [vmem:[%s1255_s0 + $0x38] sm:$0xff] }
   0x6   :  { %v1165_v19 = vsub.f32 %v34_v5, %v1147_v9  ;;  %1019 = vmatprep.subr.bf16.mxu0 %v1155_v14  ;;  %1007 = vmatprep.subr.bf16.mxu1 %v1155_v14  ;;  %v1173_v23 = vsub.f32 %v37_v10, %v1157_v15  ;;  %v207_v25 = vand.u32 4294901760, %v206_v17  ;;  %v1178_v26 = vand.u32 4294901760, %v46_v22  ;;  %v849_v10 = vld [vmem:[%s1257_s2] ss:$0 sm:$0xff]  ;;  %s1105_s2 = smov [#allocation2]  }
   0x7   :  { %1021 = vmatpush3.bf16.msra.mxu0 %v1155_v14  ;;  %1009 = vmatpush3.bf16.msra.mxu1 %v1155_v14  ;;  %v214_v28 = vand.u32 4294901760, %v213_v20  ;;  %v1184_v29 = vsub.f32 %v43_v12, %v1167_v21  ;;  %v49_v30 = vsel %vm32_vm0, %v20_v18, 0  ;;  %v146_v32 = vand.u32 4294901760, %v1176_v24  ;;  %s838_s5 = sshll.u32 %s1105_s2, 4  ;;  %s839_s5 = int_to_ptr.vmem [resolvable:$true] %s838_s5 }
   0x8   :  { %v126_v27 = vand.u32 4294901760, %v1165_v19  ;;  %v136_v31 = vand.u32 4294901760, %v1173_v23  ;;  %v208_v33 = vsub.f32 %v206_v17, %v207_v25  ;;  %v1190_v34 = vsub.f32 %v46_v22, %v1178_v26  ;;  %s1081_s6 = scalar_lea.vmem %s839_s5, 1024  ;;  %p1086_p1 = scmp.lt.s32.totalorder %s839_s5, %s839_s5 }
   0x9   :  { %v215_v36 = vsub.f32 %v213_v20, %v214_v28  ;;  %v156_v37 = vand.u32 4294901760, %v1184_v29  ;;  %v1022_v38 = vpack.c.bf16 %v214_v28, %v207_v25  ;;  %v147_v42 = vsub.f32 %v1176_v24, %v146_v32  ;;  %p1082_p0 = scmp.ne.s32.totalorder %s839_s5, %s1081_s6  ;;  %p1087_p2 = scmp.lt.s32.totalorder %s1081_s6, %s1081_s6 }
   0xa   :  { %962 = vmatprep.mubr.f32.mxu0 %v126_v27  ;;  %v127_v35 = vsub.f32 %v1165_v19, %v126_v27  ;;  %v137_v40 = vsub.f32 %v1173_v23, %v136_v31  ;;  %v209_v41 = vand.u32 4294901760, %v208_v33  ;;  %v166_v43 = vand.u32 4294901760, %v1190_v34 }
   0xb   :  { %963 = vmatmul.mubr.f32.vlgmr.msra.gmra.mrb[0].mxu0 %v136_v31  ;;  %v216_v45 = vand.u32 4294901760, %v215_v36  ;;  %1023 = vmatprep.subr.bf16.mxu0 %v1022_v38  ;;  %v157_v46 = vsub.f32 %v1184_v29, %v156_v37  ;;  %v1201_v47 = vand.u32 4294901760, %v49_v30  ;;  %v148_v50 = vand.u32 4294901760, %v147_v42  ;;  %p1088_p3 = por %p1087_p2, %p1086_p1 }
   0xc   :  { %v128_v44 = vand.u32 4294901760, %v127_v35  ;;  %965 = vmatprep.mubr.f32.mxu0 %v146_v32  ;;  %v138_v49 = vand.u32 4294901760, %v137_v40  ;;  %1025 = vmatpush3.bf16.msra.mxu0 %v1022_v38  ;;  %v167_v51 = vsub.f32 %v1190_v34, %v166_v43  ;;  %v52_v52 = vsel %vm32_vm0, %v21_v39, 0 }
   0xd   :  { %v1010_v53 = vpack.c.bf16 %v216_v45, %v209_v41  ;;  %v1209_v54 = vsub.f32 %v49_v30, %v1201_v47  ;;  %v184_v55 = vand.u32 4294901760, %v52_v52  ;;  %1027 = vmatprep.subr.bf16.mxu0 %v1155_v14  ;;  %v158_v56 = vand.u32 4294901760, %v157_v46  ;;  %p1089_p4 = pnand %p1088_p3, %p1082_p0 }
   0xe   :  { %914 = vmatprep.mubr.f32.mxu1 %v128_v44  ;;  %v55_v57 = vsel %vm32_vm0, %v22_v48, 0  ;;  %v1014_v58 = vpack.c.bf16 %v213_v20, %v206_v17  ;;  %v168_v60 = vand.u32 4294901760, %v167_v51 }
   0xf   :  { %915 = vmatmul.mubr.f32.vlgmr.msra.gmra.mrb[0].mxu1 %v138_v49  ;;  %966 = vmatmul.mubr.f32.gmra.mrb[2].mxu0 %v156_v37  ;;  %v176_v59 = vand.u32 4294901760, %v1209_v54  ;;  %v185_v61 = vsub.f32 %v52_v52, %v184_v55  ;;  %v194_v62 = vand.u32 4294901760, %v55_v57 }
  0x10   :  { %1011 = vmatprep.subr.bf16.mxu1 %v1010_v53  ;;  %917 = vmatprep.mubr.f32.mxu1 %v148_v50 }
  0x11   :  { %1013 = vmatpush3.bf16.msra.mxu1 %v1010_v53  ;;  %968 = vmatprep.mubr.f32.mxu0 %v166_v43  ;;  %v186_v63 = vand.u32 4294901760, %v185_v61  ;;  %v177_v0 = vsub.f32 %v1209_v54, %v176_v59  ;;  %v195_v1 = vsub.f32 %v55_v57, %v194_v62 }
  0x12   :  { %1015 = vmatprep.subr.bf16.mxu1 %v1014_v58 }
  0x13   :  { %918 = vmatmul.mubr.f32.gmra.mrb[2].mxu1 %v158_v56  ;;  %969 = vmatmul.mubr.f32.gmra.mrb[4].mxu0 %v176_v59  ;;  %v178_v2 = vand.u32 4294901760, %v177_v0  ;;  %v196_v3 = vand.u32 4294901760, %v195_v1  ;;  %v187_v4 = vsub.f32 %v185_v61, %v186_v63 }
  0x14   :  { %920 = vmatprep.mubr.f32.mxu1 %v168_v60  ;;  %971 = vmatprep.mubr.f32.mxu0 %v186_v63 }
  0x15   :  { %v188_v5 = vand.u32 4294901760, %v187_v4  ;;  %v197_v6 = vsub.f32 %v195_v1, %v196_v3 }
  0x17   :  { %921 = vmatmul.mubr.f32.gmra.mrb[4].mxu1 %v178_v2  ;;  %972 = vmatmul.mubr.f32.gmra.mrb[6].mxu0 %v196_v3  ;;  %v198_v7 = vand.u32 4294901760, %v197_v6 }
  0x18   :  { %923 = vmatprep.mubr.f32.mxu1 %v188_v5  ;;  %978 = vmatprep.mubr.f32.mxu0 %v1147_v9 }
  0x1b   :  { %924 = vmatmul.mubr.f32.gmra.mrb[6].mxu1 %v198_v7  ;;  %979 = vmatmul.mubr.f32.vlgmr.msra.gmra.mrb[0].mxu0 %v1157_v15 }
  0x1c   :  { %930 = vmatprep.mubr.f32.mxu1 %v1147_v9  ;;  %981 = vmatprep.mubr.f32.mxu0 %v1159_v16 }
  0x1d   :  { %1029 = vmatpush3.bf16.msra.mxu0 %v1155_v14 }
  0x1f   :  { %931 = vmatmul.mubr.f32.vlgmr.msra.gmra.mrb[0].mxu1 %v1157_v15  ;;  %982 = vmatmul.mubr.f32.gmra.mrb[2].mxu0 %v1167_v21 }
  0x20   :  { %1017 = vmatpush3.bf16.msra.mxu1 %v1014_v58  ;;  %933 = vmatprep.mubr.f32.mxu1 %v1159_v16 }
  0x21   :  { %984 = vmatprep.mubr.f32.mxu0 %v1178_v26 }
  0x23   :  { %934 = vmatmul.mubr.f32.gmra.mrb[2].mxu1 %v1167_v21  ;;  %985 = vmatmul.mubr.f32.gmra.mrb[4].mxu0 %v1201_v47 }
  0x24   :  { %936 = vmatprep.mubr.f32.mxu1 %v1178_v26  ;;  %987 = vmatprep.mubr.f32.mxu0 %v184_v55 }
  0x27   :  { %937 = vmatmul.mubr.f32.gmra.mrb[4].mxu1 %v1201_v47  ;;  %988 = vmatmul.mubr.f32.gmra.mrb[6].mxu0 %v194_v62 }
  0x28   :  { %939 = vmatprep.mubr.f32.mxu1 %v184_v55  ;;  %994 = vmatprep.mubr.f32.mxu0 %v1147_v9 }
  0x2b   :  { %940 = vmatmul.mubr.f32.gmra.mrb[6].mxu1 %v194_v62  ;;  %995 = vmatmul.mubr.f32.vlgmr.msra.gmra.mrb[0].mxu0 %v1157_v15 }
  0x2c   :  { %946 = vmatprep.mubr.f32.mxu1 %v1165_v19  ;;  %997 = vmatprep.mubr.f32.mxu0 %v1159_v16 }
  0x2f   :  { %947 = vmatmul.mubr.f32.vlgmr.msra.gmra.mrb[0].mxu1 %v1173_v23  ;;  %998 = vmatmul.mubr.f32.gmra.mrb[2].mxu0 %v1167_v21 }
  0x30   :  { %949 = vmatprep.mubr.f32.mxu1 %v1176_v24  ;;  %1000 = vmatprep.mubr.f32.mxu0 %v1178_v26 }
  0x33   :  { %950 = vmatmul.mubr.f32.gmra.mrb[2].mxu1 %v1184_v29  ;;  %1001 = vmatmul.mubr.f32.gmra.mrb[4].mxu0 %v1201_v47 }
  0x34   :  { %952 = vmatprep.mubr.f32.mxu1 %v1190_v34  ;;  %1003 = vmatprep.mubr.f32.mxu0 %v184_v55 }
  0x37   :  { %953 = vmatmul.mubr.f32.gmra.mrb[4].mxu1 %v1209_v54  ;;  %1004 = vmatmul.mubr.f32.gmra.mrb[6].mxu0 %v194_v62 }
  0x38   :  { %955 = vmatprep.mubr.f32.mxu1 %v185_v61 }
  0x3b   :  { %956 = vmatmul.mubr.f32.gmra.mrb[6].mxu1 %v195_v1 }
  0xfe   :  { %v996_v8 = vpop.f32.mrb[0].mxu0 }
  0xff   :  { %v771_v9 = vpop.f32.mrb[1].mxu0 }
 0x102   :  { %v948_v11 = vpop.f32.mrb[0].mxu1  ;;  %v999_v12 = vpop.f32.mrb[2].mxu0 }
 0x103   :  { %v1030_v13 = vadd.f32 %v948_v11, %v849_v10  ;;  %v399_v14 = vpop.f32.mrb[1].mxu1  ;;  %v783_v15 = vpop.f32.mrb[3].mxu0 }
 0x104   :  { %v1032_v16 = vadd.f32 %v849_v10, %v399_v14 }
 0x105   :  { %v1031_v17 = vadd.f32 %v1030_v13, %v996_v8 }
 0x106   :  { %v1033_v18 = vadd.f32 %v1032_v16, %v771_v9  ;;  %v951_v19 = vpop.f32.mrb[2].mxu1  ;;  %v1002_v20 = vpop.f32.mrb[4].mxu0 }
 0x107   :  { %v818_v21 = vmax.f32 %v1031_v17, 0.0  ;;  %v1034_v22 = vadd.f32 %v951_v19, %v849_v10  ;;  %v413_v23 = vpop.f32.mrb[3].mxu1  ;;  %v795_v24 = vpop.f32.mrb[5].mxu0 }
 0x108   :  { %v817_v25 = vmax.f32 %v1033_v18, 0.0  ;;  %v1036_v26 = vadd.f32 %v849_v10, %v413_v23 }
 0x109   :  { %826 = vst [vmem:[#allocation2 + $0x8] sm:$0xff] %v818_v21  ;;  %v1035_v27 = vadd.f32 %v1034_v22, %v999_v12 }
 0x10a   :  { %825 = vst [vmem:[#allocation2] sm:$0xff] %v817_v25  ;;  %v1037_v28 = vadd.f32 %v1036_v26, %v783_v15  ;;  %v954_v29 = vpop.f32.mrb[4].mxu1  ;;  %v1005_v30 = vpop.f32.mrb[6].mxu0 }
 0x10b   :  { %v820_v31 = vmax.f32 %v1035_v27, 0.0  ;;  %v1038_v32 = vadd.f32 %v954_v29, %v849_v10  ;;  %v427_v33 = vpop.f32.mrb[5].mxu1  ;;  %v807_v34 = vpop.f32.mrb[7].mxu0 }
 0x10c   :  { %v819_v35 = vmax.f32 %v1037_v28, 0.0  ;;  %v1040_v36 = vadd.f32 %v849_v10, %v427_v33 }
 0x10d   :  { %828 = vst [vmem:[#allocation2 + $0x18] sm:$0xff] %v820_v31  ;;  %v1039_v37 = vadd.f32 %v1038_v32, %v1002_v20 }
 0x10e   :  { %827 = vst [vmem:[#allocation2 + $0x10] sm:$0xff] %v819_v35  ;;  %v1041_v38 = vadd.f32 %v1040_v36, %v795_v24  ;;  %v957_v39 = vpop.f32.mrb[6].mxu1 }
 0x10f   :  { %v822_v40 = vmax.f32 %v1039_v37, 0.0  ;;  %v1042_v41 = vadd.f32 %v957_v39, %v849_v10  ;;  %v441_v42 = vpop.f32.mrb[7].mxu1 }
 0x110   :  { %v821_v43 = vmax.f32 %v1041_v38, 0.0  ;;  %v1044_v44 = vadd.f32 %v849_v10, %v441_v42 }
 0x111   :  { %830 = vst [vmem:[#allocation2 + $0x28] sm:$0xff] %v822_v40  ;;  %v1043_v45 = vadd.f32 %v1042_v41, %v1005_v30 }
 0x112   :  { %829 = vst [vmem:[#allocation2 + $0x20] sm:$0xff] %v821_v43  ;;  %v1045_v46 = vadd.f32 %v1044_v44, %v807_v34 }
 0x113   :  { %v824_v47 = vmax.f32 %v1043_v45, 0.0 }
 0x114   :  { %v823_v48 = vmax.f32 %v1045_v46, 0.0 }
 0x115   :  { %832 = vst [vmem:[#allocation2 + $0x38] sm:$0xff] %v824_v47 }
 0x116   :  { %831 = vst [vmem:[#allocation2 + $0x30] sm:$0xff] %v823_v48 }
 0x117   :  { %1092 = shalt.err (!%p1089_p4)
}
 0x118   :  { %s1093_s9 = scalar_lea.hbm %s1258_s3, 1024 }
 0x119   :  { %p1094_p5 = scmp.ne.s32.totalorder %s1258_s3, %s1093_s9  ;;  %p1097_p6 = scmp.lt.u32.totalorder %s1093_s9, %s1258_s3 }
 0x11b   :  { %p1099_p7 = pnand %p1097_p6, %p1094_p5 }
 0x11d   :  { %1102 = shalt.err (!%p1099_p7)
}
 0x11e   :  { %s1106_s14 = smov 128   ;;  %s1107_s15 = smov 8  }
 0x11f   :  { %844 = dma.vmem_to_hbm [thread:$0]  %s839_s5, 1024, %s1258_s3, [#allocation3], %s1106_s14, %s1106_s14, %s1107_s15  }
 0x120   :  { %1103 = dma.done.wait [#allocation3], 1024  }
 0x121   :  { %1104 = vsyncadd [#allocation3], 4294966272 }
 0x122   :  { %848 = vsyncpa [#allocation3], 1 }

</bundles_post_ra>
